<compile_context>
chip_gen: v7x
topology: tpu7x:2x2x1
jax: 0.10.0
libtpu: 0.0.40
codegen_flags: <defaults>
</compile_context>

<pallas_src>
import functools

import jax
import jax.numpy as jnp
from jax.experimental import pallas as pl
from jax.experimental.pallas import tpu as pltpu

EPS = 1e-5
LANE = 128                      # channel padding multiple (256 fills v6e/v7x MXU even better)
VMEM_LIMIT = 32 * 1024 * 1024   # explicit scoped-VMEM budget (safe on v5e/v6e/v7x)


def _round_up(a, b):
    return (a + b - 1) // b * b


def _pad2d(a, rows, cols):
    out = jnp.zeros((rows, cols), a.dtype)
    return out.at[: a.shape[0], : a.shape[1]].set(a)


def _fold_bn(stat_sum, stat_ssq, gamma, beta, n_rows):
    """Fold global BN stats into (scale, bias): y = h*scale + bias."""
    mean = stat_sum / n_rows
    # TODO(synk): E[h^2]-E[h]^2 is cancellation-prone when |mean| >> std; use a
    # shifted / Welford accumulation for production scales. Clamp for safety.
    var = jnp.maximum(stat_ssq / n_rows - mean * mean, 0.0)
    scale = gamma * jax.lax.rsqrt(var + EPS)
    bias = beta - mean * scale
    return jnp.concatenate([scale, bias], axis=0)        # (2, K): row0=scale, row1=bias


# --------------------------- pass 1: h1 = x @ w1 -----------------------------
def _pass1_kernel(x_ref, w1_ref, h1_ref, s_ref, ss_ref):
    @pl.when(pl.program_id(0) == 0)
    def _():
        s_ref[...] = jnp.zeros_like(s_ref)
        ss_ref[...] = jnp.zeros_like(ss_ref)

    h1 = jnp.dot(x_ref[...].astype(jnp.bfloat16), w1_ref[...],
                 preferred_element_type=jnp.float32)
    h1_ref[...] = h1
    # Padded rows of x are exact zeros and the conv bias is dropped, so padded
    # rows contribute exactly 0 to the global stats.
    s_ref[...] += jnp.sum(h1, axis=0, keepdims=True)
    ss_ref[...] += jnp.sum(h1 * h1, axis=0, keepdims=True)


# ----------------- pass 2: z1 = relu(bn1(h1)); h2 = conv_k3(z1) --------------
def _pass2_kernel(h1_ref, hp_ref, hn_ref, w2p_ref, w2c_ref, w2n_ref, sb1_ref,
                  h2_ref, s_ref, ss_ref, *, tm, seq_len, n_valid, n_padded):
    i = pl.program_id(0)

    @pl.when(i == 0)
    def _():
        s_ref[...] = jnp.zeros_like(s_ref)
        ss_ref[...] = jnp.zeros_like(ss_ref)

    scale1 = sb1_ref[0:1, :]
    bias1 = sb1_ref[1:2, :]

    # BN1 + ReLU on the tile and on the two halo rows (elementwise, f32).
    z1 = jnp.maximum(h1_ref[...] * scale1 + bias1, 0.0)           # (TM, Hp)
    z_hp = jnp.maximum(hp_ref[7:8, :] * scale1 + bias1, 0.0)      # last row of prev 8-block
    z_hn = jnp.maximum(hn_ref[0:1, :] * scale1 + bias1, 0.0)      # first row of next 8-block

    # Shifted taps: in-tile rows + halo rows (no pltpu.roll, no tile-edge wrap).
    z_prev = jnp.concatenate([z_hp, z1[:-1, :]], axis=0)
    z_next = jnp.concatenate([z1[1:, :], z_hn], axis=0)

    # Sequence-boundary masks on the flattened (batch*seq) row axis; mask in f32
    # (v5e has no bf16 VALU), cast to bf16 only at the MXU inputs.
    row = i * tm + jax.lax.broadcasted_iota(jnp.int32, (tm, 1), 0)
    pos = row % seq_len
    z_prev = jnp.where(pos == 0, 0.0, z_prev)
    z_next = jnp.where(pos == seq_len - 1, 0.0, z_next)

    # k=3 conv as three accumulating K=H matmuls (no (TM, 3H) taps materialized).
    h2 = jnp.dot(z_prev.astype(jnp.bfloat16), w2p_ref[...],
                 preferred_element_type=jnp.float32)
    h2 = h2 + jnp.dot(z1.astype(jnp.bfloat16), w2c_ref[...],
                      preferred_element_type=jnp.float32)
    h2 = h2 + jnp.dot(z_next.astype(jnp.bfloat16), w2n_ref[...],
                      preferred_element_type=jnp.float32)

    if n_padded != n_valid:   # keep global BN stats exact under row padding
        h2 = jnp.where(row < n_valid, h2, 0.0)

    h2_ref[...] = h2
    s_ref[...] += jnp.sum(h2, axis=0, keepdims=True)
    ss_ref[...] += jnp.sum(h2 * h2, axis=0, keepdims=True)


# ------------------- pass 3: z2 = relu(bn2(h2)); h3 = z2 @ w3 ----------------
def _pass3_kernel(h2_ref, w3_ref, sb2_ref, h3_ref, s_ref, ss_ref,
                  *, tm, n_valid, n_padded):
    i = pl.program_id(0)

    @pl.when(i == 0)
    def _():
        s_ref[...] = jnp.zeros_like(s_ref)
        ss_ref[...] = jnp.zeros_like(ss_ref)

    z2 = jnp.maximum(h2_ref[...] * sb2_ref[0:1, :] + sb2_ref[1:2, :], 0.0)
    h3 = jnp.dot(z2.astype(jnp.bfloat16), w3_ref[...],
                 preferred_element_type=jnp.float32)

    if n_padded != n_valid:
        row = i * tm + jax.lax.broadcasted_iota(jnp.int32, (tm, 1), 0)
        h3 = jnp.where(row < n_valid, h3, 0.0)

    h3_ref[...] = h3
    s_ref[...] += jnp.sum(h3, axis=0, keepdims=True)
    ss_ref[...] += jnp.sum(h3 * h3, axis=0, keepdims=True)


# ----------------- pass 4: out = relu(bn3(h3) + x) (elementwise) -------------
def _pass4_kernel(h3_ref, x_ref, sb3_ref, o_ref):
    z3 = h3_ref[...] * sb3_ref[0:1, :] + sb3_ref[1:2, :]
    o_ref[...] = jnp.maximum(z3 + x_ref[...], 0.0)


# ------------------------------- wrapper -------------------------------------
def bottleneck_pallas(x, params, *, block_rows=512):
    """x: (B, L, C) float32, channels-last. Returns (B, L, C) float32."""
    assert block_rows % 8 == 0
    B, L, C = x.shape
    H = params["w1"].shape[1]
    N = B * L

    Cp = _round_up(C, LANE)
    Hp = _round_up(H, LANE)
    TM = min(block_rows, _round_up(N, 8))
    Np = _round_up(N, TM)
    grid = (Np // TM,)
    n_blk8 = TM // 8
    last_blk8 = Np // 8 - 1

    # --- layout plumbing (lane-dense, MXU-aligned) kept in the wrapper -------
    x2d = _pad2d(x.reshape(N, C), Np, Cp)
    w1 = _pad2d(params["w1"], Cp, Hp).astype(jnp.bfloat16)
    w2p = _pad2d(params["w2"][0], Hp, Hp).astype(jnp.bfloat16)
    w2c = _pad2d(params["w2"][1], Hp, Hp).astype(jnp.bfloat16)
    w2n = _pad2d(params["w2"][2], Hp, Hp).astype(jnp.bfloat16)
    w3 = _pad2d(params["w3"], Hp, Cp).astype(jnp.bfloat16)
    # Padded channels get gamma=beta=0 -> they stay exactly 0 end to end.
    g1, be1 = _pad2d(params["g1"], 1, Hp), _pad2d(params["be1"], 1, Hp)
    g2, be2 = _pad2d(params["g2"], 1, Hp), _pad2d(params["be2"], 1, Hp)
    g3, be3 = _pad2d(params["g3"], 1, Cp), _pad2d(params["be3"], 1, Cp)

    row_spec_c = pl.BlockSpec((TM, Cp), lambda i: (i, 0))
    row_spec_h = pl.BlockSpec((TM, Hp), lambda i: (i, 0))

    def const_spec(shape):            # resident constants: DMA'd once, block (0,0)
        return pl.BlockSpec(shape, lambda i: (0, 0))

    stat_spec_h = const_spec((1, Hp))
    stat_spec_c = const_spec((1, Cp))

    cp_arb = pltpu.CompilerParams(dimension_semantics=("arbitrary",),
                                  vmem_limit_bytes=VMEM_LIMIT)
    cp_par = pltpu.CompilerParams(dimension_semantics=("parallel",),
                                  vmem_limit_bytes=VMEM_LIMIT)

    # ---- pass 1: h1 = x @ w1, global stats(h1) ------------------------------
    h1, s1, ss1 = pl.pallas_call(
        _pass1_kernel,
        grid=grid,
        in_specs=[row_spec_c, const_spec((Cp, Hp))],
        out_specs=[row_spec_h, stat_spec_h, stat_spec_h],
        out_shape=[jax.ShapeDtypeStruct((Np, Hp), jnp.float32),
                   jax.ShapeDtypeStruct((1, Hp), jnp.float32),
                   jax.ShapeDtypeStruct((1, Hp), jnp.float32)],
        compiler_params=cp_arb,
    )(x2d, w1)
    sb1 = _fold_bn(s1, ss1, g1, be1, float(N))

    # ---- pass 2: z1 = relu(bn1(h1)), h2 = conv_k3(z1), global stats(h2) -----
    halo_prev_spec = pl.BlockSpec(
        (8, Hp), lambda i: (jnp.maximum(i * n_blk8 - 1, 0), 0))
    halo_next_spec = pl.BlockSpec(
        (8, Hp), lambda i: (jnp.minimum((i + 1) * n_blk8, last_blk8), 0))
    h2, s2, ss2 = pl.pallas_call(
        functools.partial(_pass2_kernel, tm=TM, seq_len=L, n_valid=N, n_padded=Np),
        grid=grid,
        in_specs=[row_spec_h, halo_prev_spec, halo_next_spec,
                  const_spec((Hp, Hp)), const_spec((Hp, Hp)), const_spec((Hp, Hp)),
                  const_spec((2, Hp))],
        out_specs=[row_spec_h, stat_spec_h, stat_spec_h],
        out_shape=[jax.ShapeDtypeStruct((Np, Hp), jnp.float32),
                   jax.ShapeDtypeStruct((1, Hp), jnp.float32),
                   jax.ShapeDtypeStruct((1, Hp), jnp.float32)],
        compiler_params=cp_arb,
    )(h1, h1, h1, w2p, w2c, w2n, sb1)
    sb2 = _fold_bn(s2, ss2, g2, be2, float(N))

    # ---- pass 3: z2 = relu(bn2(h2)), h3 = z2 @ w3, global stats(h3) ---------
    h3, s3, ss3 = pl.pallas_call(
        functools.partial(_pass3_kernel, tm=TM, n_valid=N, n_padded=Np),
        grid=grid,
        in_specs=[row_spec_h, const_spec((Hp, Cp)), const_spec((2, Hp))],
        out_specs=[row_spec_c, stat_spec_c, stat_spec_c],
        out_shape=[jax.ShapeDtypeStruct((Np, Cp), jnp.float32),
                   jax.ShapeDtypeStruct((1, Cp), jnp.float32),
                   jax.ShapeDtypeStruct((1, Cp), jnp.float32)],
        compiler_params=cp_arb,
    )(h2, w3, sb2)
    sb3 = _fold_bn(s3, ss3, g3, be3, float(N))

    # ---- pass 4: out = relu(bn3(h3) + x)  (pure elementwise, megacore-able) --
    out2d = pl.pallas_call(
        _pass4_kernel,
        grid=grid,
        in_specs=[row_spec_c, row_spec_c, const_spec((2, Cp))],
        out_specs=row_spec_c,
        out_shape=jax.ShapeDtypeStruct((Np, Cp), jnp.float32),
        compiler_params=cp_par,
    )(h3, x2d, sb3)

    return out2d[:N, :C].reshape(B, L, C)


# ------------------------------ references -----------------------------------
def bottleneck_reference(x, p, matmul_dtype=jnp.float32):
    """Faithful module math (conv biases included, two-pass BN).

    matmul_dtype=float32 -> exact PyTorch-style f32 semantics.
    matmul_dtype=bfloat16 -> mirrors the kernel's mixed-precision matmuls.
    """
    def mm(a, w):
        return jnp.dot(a.astype(matmul_dtype), w.astype(matmul_dtype),
                       preferred_element_type=jnp.float32)

    def bn(h, gamma, beta):
        mean = jnp.mean(h, axis=0, keepdims=True)
        var = jnp.mean((h - mean) ** 2, axis=0, keepdims=True)
        return (h - mean) * jax.lax.rsqrt(var + EPS) * gamma + beta

    B, L, C = x.shape
    x2d = x.reshape(B * L, C)

    h1 = mm(x2d, p["w1"]) + p["b1"]
    z1 = jnp.maximum(bn(h1, p["g1"], p["be1"]), 0.0)

    z3d = z1.reshape(B, L, -1)
    zero = jnp.zeros((B, 1, z3d.shape[-1]), z3d.dtype)
    z_prev = jnp.concatenate([zero, z3d[:, :-1, :]], axis=1).reshape(B * L, -1)
    z_next = jnp.concatenate([z3d[:, 1:, :], zero], axis=1).reshape(B * L, -1)
    h2 = (mm(z_prev, p["w2"][0]) + mm(z1, p["w2"][1]) + mm(z_next, p["w2"][2])
          + p["b2"])
    z2 = jnp.maximum(bn(h2, p["g2"], p["be2"]), 0.0)

    h3 = mm(z2, p["w3"]) + p["b3"]
    z3 = bn(h3, p["g3"], p["be3"])
    return jnp.maximum(z3 + x2d, 0.0).reshape(B, L, C)


def init_params(key, in_channels):
    """Deterministic synthetic parameters (shapes follow BottleNeck.__init__)."""
    hidden = in_channels // 4
    ks = jax.random.split(key, 13)
    f = lambda k, shape, s=0.1: (s * jax.random.normal(k, shape)).astype(jnp.float32)
    return {
        # cov1: Conv1d(C, H, k=1)  -> stored transposed as (C, H)
        "w1": f(ks[0], (in_channels, hidden)),
        "b1": f(ks[1], (1, hidden)),
        "g1": 1.0 + f(ks[2], (1, hidden)),
        "be1": f(ks[3], (1, hidden)),
        # cov2: Conv1d(H, H, k=3, pad=1) -> stored as (3, H_in, H_out); tap 0 = t-1
        "w2": f(ks[4], (3, hidden, hidden)),
        "b2": f(ks[5], (1, hidden)),
        "g2": 1.0 + f(ks[6], (1, hidden)),
        "be2": f(ks[7], (1, hidden)),
        # cov3: Conv1d(H, C, k=1) -> stored transposed as (H, C)
        "w3": f(ks[8], (hidden, in_channels)),
        "b3": f(ks[9], (1, in_channels)),
        "g3": 1.0 + f(ks[10], (1, in_channels)),
        "be3": f(ks[11], (1, in_channels)),
    }


if __name__ == "__main__":
    B, L, C_IN = 2, 16, 16          # x: (batch, seq, channels); hidden = 4
    key = jax.random.PRNGKey(0)
    kx, kp = jax.random.split(key)
    x = jax.random.normal(kx, (B, L, C_IN), dtype=jnp.float32)
    params = init_params(kp, C_IN)

    # block_rows=8 exercises a 4-tile grid (halos + cross-tile BN stats) at demo size.
    run = jax.jit(functools.partial(bottleneck_pallas, block_rows=8))
    out = jax.block_until_ready(run(x, params))
    assert out.shape == (B, L, C_IN)

    # Tight check vs a reference that mirrors the kernel's bf16 matmuls
    # (validates halos, masks, dropped pre-BN biases, two-phase BN fold).
    ref_bf16 = bottleneck_reference(x, params, matmul_dtype=jnp.bfloat16)
    assert jnp.allclose(out, ref_bf16, atol=5e-3, rtol=5e-3), \
        "mismatch vs bf16-matched reference"

    # Loose check vs exact f32 module semantics.
    ref_f32 = bottleneck_reference(x, params, matmul_dtype=jnp.float32)
    assert jnp.allclose(out, ref_f32, atol=5e-2, rtol=5e-2), \
        "mismatch vs f32 reference"

    print("KERNEL_OK")
</pallas_src>

<mosaic_0001>
module attributes {stable_mosaic.version = 11 : i64} {
  func.func @_pass1_kernel(%arg0: i32, %arg1: memref<8x128xf32, #tpu.memory_space<vmem>>, %arg2: memref<128x128xbf16, #tpu.memory_space<vmem>>, %arg3: memref<8x128xf32, #tpu.memory_space<vmem>>, %arg4: memref<1x128xf32, #tpu.memory_space<vmem>>, %arg5: memref<1x128xf32, #tpu.memory_space<vmem>>) attributes {dimension_semantics = [#tpu.dimension_semantics<arbitrary>], iteration_bounds = array<i64: 4>, scalar_prefetch = 0 : i64, scratch_operands = 0 : i64, tpu.core_type = #tpu.core_type<tc>, window_params = [{transform_indices = @transform_0, window_bounds = array<i64: 8, 128>}, {pipeline_mode = #tpu.pipeline_mode<synchronous>, transform_indices = @transform_1, window_bounds = array<i64: 128, 128>}, {transform_indices = @transform_2, window_bounds = array<i64: 8, 128>}, {pipeline_mode = #tpu.pipeline_mode<synchronous>, transform_indices = @transform_3, window_bounds = array<i64: 1, 128>}, {pipeline_mode = #tpu.pipeline_mode<synchronous>, transform_indices = @transform_4, window_bounds = array<i64: 1, 128>}]} {
    %c0_i32 = arith.constant 0 : i32
    %0 = arith.cmpi eq, %arg0, %c0_i32 : i32
    %1 = arith.extui %0 : i1 to i32
    %c0_i32_0 = arith.constant 0 : i32
    %2 = arith.cmpi ne, %1, %c0_i32_0 : i32
    scf.if %2 {
      %cst_16 = arith.constant 0.000000e+00 : f32
      %19 = vector.broadcast %cst_16 : f32 to vector<1x128xf32>
      %c0_17 = arith.constant 0 : index
      %c0_18 = arith.constant 0 : index
      %20 = vector.load %arg4[%c0_17, %c0_18] : memref<1x128xf32, #tpu.memory_space<vmem>>, vector<1x128xf32>
      tpu.vector_store %arg4[%c0_17, %c0_18], %19 {strides = array<i32>} : memref<1x128xf32, #tpu.memory_space<vmem>>, vector<1x128xf32>,
      %cst_19 = arith.constant 0.000000e+00 : f32
      %21 = vector.broadcast %cst_19 : f32 to vector<1x128xf32>
      %c0_20 = arith.constant 0 : index
      %c0_21 = arith.constant 0 : index
      %22 = vector.load %arg5[%c0_20, %c0_21] : memref<1x128xf32, #tpu.memory_space<vmem>>, vector<1x128xf32>
      tpu.vector_store %arg5[%c0_20, %c0_21], %21 {strides = array<i32>} : memref<1x128xf32, #tpu.memory_space<vmem>>, vector<1x128xf32>,
    } else {
    }
    %c0 = arith.constant 0 : index
    %c0_1 = arith.constant 0 : index
    %3 = vector.load %arg1[%c0, %c0_1] : memref<8x128xf32, #tpu.memory_space<vmem>>, vector<8x128xf32>
    %4 = arith.truncf %3 : vector<8x128xf32> to vector<8x128xbf16>
    %c0_2 = arith.constant 0 : index
    %c0_3 = arith.constant 0 : index
    %5 = vector.load %arg2[%c0_2, %c0_3] : memref<128x128xbf16, #tpu.memory_space<vmem>>, vector<128x128xbf16>
    %cst = arith.constant dense<0.000000e+00> : vector<8x128xf32>
    %6 = tpu.matmul %4, %5, %cst {dimension_numbers = #tpu.dot_dimension_numbers<[1], [0], [0], [1], [0, 0, 1, 1], [], []>} : vector<8x128xbf16>, vector<128x128xbf16>, vector<8x128xf32> -> vector<8x128xf32>
    %c0_4 = arith.constant 0 : index
    %c0_5 = arith.constant 0 : index
    %7 = vector.load %arg3[%c0_4, %c0_5] : memref<8x128xf32, #tpu.memory_space<vmem>>, vector<8x128xf32>
    tpu.vector_store %arg3[%c0_4, %c0_5], %6 {strides = array<i32>} : memref<8x128xf32, #tpu.memory_space<vmem>>, vector<8x128xf32>,
    %c0_6 = arith.constant 0 : index
    %c0_7 = arith.constant 0 : index
    %8 = vector.load %arg4[%c0_6, %c0_7] : memref<1x128xf32, #tpu.memory_space<vmem>>, vector<1x128xf32>
    %cst_8 = arith.constant dense<0.000000e+00> : vector<128xf32>
    %9 = vector.multi_reduction <add>, %6, %cst_8 [0] : vector<8x128xf32> to vector<128xf32>
    %10 = vector.shape_cast %9 : vector<128xf32> to vector<1x128xf32>
    %11 = arith.addf %8, %10 : vector<1x128xf32>
    %c0_9 = arith.constant 0 : index
    %c0_10 = arith.constant 0 : index
    %12 = vector.load %arg4[%c0_9, %c0_10] : memref<1x128xf32, #tpu.memory_space<vmem>>, vector<1x128xf32>
    tpu.vector_store %arg4[%c0_9, %c0_10], %11 {strides = array<i32>} : memref<1x128xf32, #tpu.memory_space<vmem>>, vector<1x128xf32>,
    %c0_11 = arith.constant 0 : index
    %c0_12 = arith.constant 0 : index
    %13 = vector.load %arg5[%c0_11, %c0_12] : memref<1x128xf32, #tpu.memory_space<vmem>>, vector<1x128xf32>
    %14 = arith.mulf %6, %6 : vector<8x128xf32>
    %cst_13 = arith.constant dense<0.000000e+00> : vector<128xf32>
    %15 = vector.multi_reduction <add>, %14, %cst_13 [0] : vector<8x128xf32> to vector<128xf32>
    %16 = vector.shape_cast %15 : vector<128xf32> to vector<1x128xf32>
    %17 = arith.addf %13, %16 : vector<1x128xf32>
    %c0_14 = arith.constant 0 : index
    %c0_15 = arith.constant 0 : index
    %18 = vector.load %arg5[%c0_14, %c0_15] : memref<1x128xf32, #tpu.memory_space<vmem>>, vector<1x128xf32>
    tpu.vector_store %arg5[%c0_14, %c0_15], %17 {strides = array<i32>} : memref<1x128xf32, #tpu.memory_space<vmem>>, vector<1x128xf32>,
    return
  }
  func.func @transform_0(%arg0: i32) -> (i32, i32) {
    %c0_i32 = arith.constant 0 : i32
    %c0_i32_0 = arith.constant 0 : i32
    return %arg0, %c0_i32 : i32, i32
  }
  func.func @transform_1(%arg0: i32) -> (i32, i32) {
    %c0_i32 = arith.constant 0 : i32
    %c0_i32_0 = arith.constant 0 : i32
    %c0_i32_1 = arith.constant 0 : i32
    return %c0_i32, %c0_i32_0 : i32, i32
  }
  func.func @transform_2(%arg0: i32) -> (i32, i32) {
    %c0_i32 = arith.constant 0 : i32
    %c0_i32_0 = arith.constant 0 : i32
    return %arg0, %c0_i32 : i32, i32
  }
  func.func @transform_3(%arg0: i32) -> (i32, i32) {
    %c0_i32 = arith.constant 0 : i32
    %c0_i32_0 = arith.constant 0 : i32
    %c0_i32_1 = arith.constant 0 : i32
    return %c0_i32, %c0_i32_0 : i32, i32
  }
  func.func @transform_4(%arg0: i32) -> (i32, i32) {
    %c0_i32 = arith.constant 0 : i32
    %c0_i32_0 = arith.constant 0 : i32
    %c0_i32_1 = arith.constant 0 : i32
    return %c0_i32, %c0_i32_0 : i32, i32
  }
}

module attributes {stable_mosaic.version = 11 : i64} {
  func.func @_pass2_kernel(%arg0: i32, %arg1: memref<8x128xf32, #tpu.memory_space<vmem>>, %arg2: memref<8x128xf32, #tpu.memory_space<vmem>>, %arg3: memref<8x128xf32, #tpu.memory_space<vmem>>, %arg4: memref<128x128xbf16, #tpu.memory_space<vmem>>, %arg5: memref<128x128xbf16, #tpu.memory_space<vmem>>, %arg6: memref<128x128xbf16, #tpu.memory_space<vmem>>, %arg7: memref<2x128xf32, #tpu.memory_space<vmem>>, %arg8: memref<8x128xf32, #tpu.memory_space<vmem>>, %arg9: memref<1x128xf32, #tpu.memory_space<vmem>>, %arg10: memref<1x128xf32, #tpu.memory_space<vmem>>) attributes {dimension_semantics = [#tpu.dimension_semantics<arbitrary>], iteration_bounds = array<i64: 4>, scalar_prefetch = 0 : i64, scratch_operands = 0 : i64, tpu.core_type = #tpu.core_type<tc>, window_params = [{transform_indices = @transform_0, window_bounds = array<i64: 8, 128>}, {transform_indices = @transform_1, window_bounds = array<i64: 8, 128>}, {transform_indices = @transform_2, window_bounds = array<i64: 8, 128>}, {pipeline_mode = #tpu.pipeline_mode<synchronous>, transform_indices = @transform_3, window_bounds = array<i64: 128, 128>}, {pipeline_mode = #tpu.pipeline_mode<synchronous>, transform_indices = @transform_4, window_bounds = array<i64: 128, 128>}, {pipeline_mode = #tpu.pipeline_mode<synchronous>, transform_indices = @transform_5, window_bounds = array<i64: 128, 128>}, {pipeline_mode = #tpu.pipeline_mode<synchronous>, transform_indices = @transform_6, window_bounds = array<i64: 2, 128>}, {transform_indices = @transform_7, window_bounds = array<i64: 8, 128>}, {pipeline_mode = #tpu.pipeline_mode<synchronous>, transform_indices = @transform_8, window_bounds = array<i64: 1, 128>}, {pipeline_mode = #tpu.pipeline_mode<synchronous>, transform_indices = @transform_9, window_bounds = array<i64: 1, 128>}]} {
    %c0_i32 = arith.constant 0 : i32
    %0 = arith.cmpi eq, %arg0, %c0_i32 : i32
    %1 = arith.extui %0 : i1 to i32
    %c0_i32_0 = arith.constant 0 : i32
    %2 = arith.cmpi ne, %1, %c0_i32_0 : i32
    scf.if %2 {
      %cst_38 = arith.constant 0.000000e+00 : f32
      %81 = vector.broadcast %cst_38 : f32 to vector<1x128xf32>
      %c0_39 = arith.constant 0 : index
      %c0_40 = arith.constant 0 : index
      %82 = vector.load %arg9[%c0_39, %c0_40] : memref<1x128xf32, #tpu.memory_space<vmem>>, vector<1x128xf32>
      tpu.vector_store %arg9[%c0_39, %c0_40], %81 {strides = array<i32>} : memref<1x128xf32, #tpu.memory_space<vmem>>, vector<1x128xf32>,
      %cst_41 = arith.constant 0.000000e+00 : f32
      %83 = vector.broadcast %cst_41 : f32 to vector<1x128xf32>
      %c0_42 = arith.constant 0 : index
      %c0_43 = arith.constant 0 : index
      %84 = vector.load %arg10[%c0_42, %c0_43] : memref<1x128xf32, #tpu.memory_space<vmem>>, vector<1x128xf32>
      tpu.vector_store %arg10[%c0_42, %c0_43], %83 {strides = array<i32>} : memref<1x128xf32, #tpu.memory_space<vmem>>, vector<1x128xf32>,
    } else {
    }
    %c0 = arith.constant 0 : index
    %c0_1 = arith.constant 0 : index
    %3 = vector.load %arg7[%c0, %c0_1] : memref<2x128xf32, #tpu.memory_space<vmem>>, vector<1x128xf32>
    %c1 = arith.constant 1 : index
    %c0_2 = arith.constant 0 : index
    %4 = vector.load %arg7[%c1, %c0_2] : memref<2x128xf32, #tpu.memory_space<vmem>>, vector<1x128xf32>
    %c0_3 = arith.constant 0 : index
    %c0_4 = arith.constant 0 : index
    %5 = vector.load %arg1[%c0_3, %c0_4] : memref<8x128xf32, #tpu.memory_space<vmem>>, vector<8x128xf32>
    %6 = vector.broadcast %3 : vector<1x128xf32> to vector<8x128xf32>
    %7 = arith.mulf %5, %6 : vector<8x128xf32>
    %8 = vector.broadcast %4 : vector<1x128xf32> to vector<8x128xf32>
    %9 = arith.addf %7, %8 : vector<8x128xf32>
    %cst = arith.constant 0.000000e+00 : f32
    %10 = vector.broadcast %cst : f32 to vector<8x128xf32>
    %11 = arith.maximumf %9, %10 : vector<8x128xf32>
    %c7 = arith.constant 7 : index
    %c0_5 = arith.constant 0 : index
    %12 = vector.load %arg2[%c7, %c0_5] : memref<8x128xf32, #tpu.memory_space<vmem>>, vector<1x128xf32>
    %13 = arith.mulf %12, %3 : vector<1x128xf32>
    %14 = arith.addf %13, %4 : vector<1x128xf32>
    %cst_6 = arith.constant 0.000000e+00 : f32
    %15 = vector.broadcast %cst_6 : f32 to vector<1x128xf32>
    %16 = arith.maximumf %14, %15 : vector<1x128xf32>
    %c0_7 = arith.constant 0 : index
    %c0_8 = arith.constant 0 : index
    %17 = vector.load %arg3[%c0_7, %c0_8] : memref<8x128xf32, #tpu.memory_space<vmem>>, vector<1x128xf32>
    %18 = arith.mulf %17, %3 : vector<1x128xf32>
    %19 = arith.addf %18, %4 : vector<1x128xf32>
    %cst_9 = arith.constant 0.000000e+00 : f32
    %20 = vector.broadcast %cst_9 : f32 to vector<1x128xf32>
    %21 = arith.maximumf %19, %20 : vector<1x128xf32>
    %22 = vector.extract_strided_slice %11 {offsets = [0, 0], sizes = [7, 128], strides = [1, 1]} : vector<8x128xf32> to vector<7x128xf32>
    %23 = tpu.concatenate %16, %22 in 0 : vector<1x128xf32>, vector<7x128xf32> -> vector<8x128xf32>
    %24 = vector.extract_strided_slice %11 {offsets = [1, 0], sizes = [7, 128], strides = [1, 1]} : vector<8x128xf32> to vector<7x128xf32>
    %25 = tpu.concatenate %24, %21 in 0 : vector<7x128xf32>, vector<1x128xf32> -> vector<8x128xf32>
    %c8_i32 = arith.constant 8 : i32
    %26 = arith.muli %arg0, %c8_i32 : i32
    %27 = tpu.iota {dimensions = array<i32: 0>} : vector<8x1xi32>
    %28 = vector.broadcast %26 : i32 to vector<8x1xi32>
    %29 = arith.addi %28, %27 : vector<8x1xi32>
    %c16_i32 = arith.constant 16 : i32
    %c0_i32_10 = arith.constant 0 : i32
    %30 = arith.cmpi eq, %c16_i32, %c0_i32_10 : i32
    %c1_i32 = arith.constant 1 : i32
    %31 = arith.select %30, %c1_i32, %c16_i32 : i32
    %32 = vector.broadcast %31 : i32 to vector<8x1xi32>
    %33 = arith.remsi %29, %32 : vector<8x1xi32>
    %c0_i32_11 = arith.constant 0 : i32
    %34 = vector.broadcast %c0_i32_11 : i32 to vector<8x1xi32>
    %35 = arith.cmpi ne, %33, %34 : vector<8x1xi32>
    %c0_i32_12 = arith.constant 0 : i32
    %36 = vector.broadcast %c0_i32_12 : i32 to vector<8x1xi32>
    %37 = arith.cmpi slt, %33, %36 : vector<8x1xi32>
    %c0_i32_13 = arith.constant 0 : i32
    %38 = arith.cmpi slt, %31, %c0_i32_13 : i32
    %39 = vector.broadcast %38 : i1 to vector<8x1xi1>
    %40 = vector.broadcast %39 : vector<8x1xi1> to vector<8x1xi1>
    %41 = arith.xori %37, %40 : vector<8x1xi1>
    %42 = arith.andi %41, %35 : vector<8x1xi1>
    %43 = vector.broadcast %31 : i32 to vector<8x1xi32>
    %44 = arith.addi %33, %43 : vector<8x1xi32>
    %45 = arith.select %42, %44, %33 : vector<8x1xi1>, vector<8x1xi32>
    %c0_i32_14 = arith.constant 0 : i32
    %46 = vector.broadcast %c0_i32_14 : i32 to vector<8x1xi32>
    %47 = arith.cmpi eq, %45, %46 : vector<8x1xi32>
    %cst_15 = arith.constant 0.000000e+00 : f32
    %48 = vector.shape_cast %47 : vector<8x1xi1> to vector<8x1xi1>
    %49 = vector.broadcast %48 : vector<8x1xi1> to vector<8x128xi1>
    %50 = vector.broadcast %cst_15 : f32 to vector<8x128xf32>
    %51 = arith.select %49, %50, %23 : vector<8x128xi1>, vector<8x128xf32>
    %c15_i32 = arith.constant 15 : i32
    %52 = vector.broadcast %c15_i32 : i32 to vector<8x1xi32>
    %53 = arith.cmpi eq, %45, %52 : vector<8x1xi32>
    %cst_16 = arith.constant 0.000000e+00 : f32
    %54 = vector.shape_cast %53 : vector<8x1xi1> to vector<8x1xi1>
    %55 = vector.broadcast %54 : vector<8x1xi1> to vector<8x128xi1>
    %56 = vector.broadcast %cst_16 : f32 to vector<8x128xf32>
    %57 = arith.select %55, %56, %25 : vector<8x128xi1>, vector<8x128xf32>
    %58 = arith.truncf %51 : vector<8x128xf32> to vector<8x128xbf16>
    %c0_17 = arith.constant 0 : index
    %c0_18 = arith.constant 0 : index
    %59 = vector.load %arg4[%c0_17, %c0_18] : memref<128x128xbf16, #tpu.memory_space<vmem>>, vector<128x128xbf16>
    %cst_19 = arith.constant dense<0.000000e+00> : vector<8x128xf32>
    %60 = tpu.matmul %58, %59, %cst_19 {dimension_numbers = #tpu.dot_dimension_numbers<[1], [0], [0], [1], [0, 0, 1, 1], [], []>} : vector<8x128xbf16>, vector<128x128xbf16>, vector<8x128xf32> -> vector<8x128xf32>
    %61 = arith.truncf %11 : vector<8x128xf32> to vector<8x128xbf16>
    %c0_20 = arith.constant 0 : index
    %c0_21 = arith.constant 0 : index
    %62 = vector.load %arg5[%c0_20, %c0_21] : memref<128x128xbf16, #tpu.memory_space<vmem>>, vector<128x128xbf16>
    %cst_22 = arith.constant dense<0.000000e+00> : vector<8x128xf32>
    %63 = tpu.matmul %61, %62, %cst_22 {dimension_numbers = #tpu.dot_dimension_numbers<[1], [0], [0], [1], [0, 0, 1, 1], [], []>} : vector<8x128xbf16>, vector<128x128xbf16>, vector<8x128xf32> -> vector<8x128xf32>
    %64 = arith.addf %60, %63 : vector<8x128xf32>
    %65 = arith.truncf %57 : vector<8x128xf32> to vector<8x128xbf16>
    %c0_23 = arith.constant 0 : index
    %c0_24 = arith.constant 0 : index
    %66 = vector.load %arg6[%c0_23, %c0_24] : memref<128x128xbf16, #tpu.memory_space<vmem>>, vector<128x128xbf16>
    %cst_25 = arith.constant dense<0.000000e+00> : vector<8x128xf32>
    %67 = tpu.matmul %65, %66, %cst_25 {dimension_numbers = #tpu.dot_dimension_numbers<[1], [0], [0], [1], [0, 0, 1, 1], [], []>} : vector<8x128xbf16>, vector<128x128xbf16>, vector<8x128xf32> -> vector<8x128xf32>
    %68 = arith.addf %64, %67 : vector<8x128xf32>
    %c0_26 = arith.constant 0 : index
    %c0_27 = arith.constant 0 : index
    %69 = vector.load %arg8[%c0_26, %c0_27] : memref<8x128xf32, #tpu.memory_space<vmem>>, vector<8x128xf32>
    tpu.vector_store %arg8[%c0_26, %c0_27], %68 {strides = array<i32>} : memref<8x128xf32, #tpu.memory_space<vmem>>, vector<8x128xf32>,
    %c0_28 = arith.constant 0 : index
    %c0_29 = arith.constant 0 : index
    %70 = vector.load %arg9[%c0_28, %c0_29] : memref<1x128xf32, #tpu.memory_space<vmem>>, vector<1x128xf32>
    %cst_30 = arith.constant dense<0.000000e+00> : vector<128xf32>
    %71 = vector.multi_reduction <add>, %68, %cst_30 [0] : vector<8x128xf32> to vector<128xf32>
    %72 = vector.shape_cast %71 : vector<128xf32> to vector<1x128xf32>
    %73 = arith.addf %70, %72 : vector<1x128xf32>
    %c0_31 = arith.constant 0 : index
    %c0_32 = arith.constant 0 : index
    %74 = vector.load %arg9[%c0_31, %c0_32] : memref<1x128xf32, #tpu.memory_space<vmem>>, vector<1x128xf32>
    tpu.vector_store %arg9[%c0_31, %c0_32], %73 {strides = array<i32>} : memref<1x128xf32, #tpu.memory_space<vmem>>, vector<1x128xf32>,
    %c0_33 = arith.constant 0 : index
    %c0_34 = arith.constant 0 : index
    %75 = vector.load %arg10[%c0_33, %c0_34] : memref<1x128xf32, #tpu.memory_space<vmem>>, vector<1x128xf32>
    %76 = arith.mulf %68, %68 : vector<8x128xf32>
    %cst_35 = arith.constant dense<0.000000e+00> : vector<128xf32>
    %77 = vector.multi_reduction <add>, %76, %cst_35 [0] : vector<8x128xf32> to vector<128xf32>
    %78 = vector.shape_cast %77 : vector<128xf32> to vector<1x128xf32>
    %79 = arith.addf %75, %78 : vector<1x128xf32>
    %c0_36 = arith.constant 0 : index
    %c0_37 = arith.constant 0 : index
    %80 = vector.load %arg10[%c0_36, %c0_37] : memref<1x128xf32, #tpu.memory_space<vmem>>, vector<1x128xf32>
    tpu.vector_store %arg10[%c0_36, %c0_37], %79 {strides = array<i32>} : memref<1x128xf32, #tpu.memory_space<vmem>>, vector<1x128xf32>,
    return
  }
  func.func @transform_0(%arg0: i32) -> (i32, i32) {
    %c0_i32 = arith.constant 0 : i32
    %c0_i32_0 = arith.constant 0 : i32
    return %arg0, %c0_i32 : i32, i32
  }
  func.func @transform_1(%arg0: i32) -> (i32, i32) {
    %c1_i32 = arith.constant 1 : i32
    %0 = arith.muli %arg0, %c1_i32 : i32
    %c1_i32_0 = arith.constant 1 : i32
    %1 = arith.subi %0, %c1_i32_0 : i32
    %c0_i32 = arith.constant 0 : i32
    %2 = arith.maxsi %1, %c0_i32 : i32
    %c0_i32_1 = arith.constant 0 : i32
    %c0_i32_2 = arith.constant 0 : i32
    return %2, %c0_i32_1 : i32, i32
  }
  func.func @transform_2(%arg0: i32) -> (i32, i32) {
    %c1_i32 = arith.constant 1 : i32
    %0 = arith.addi %arg0, %c1_i32 : i32
    %c1_i32_0 = arith.constant 1 : i32
    %1 = arith.muli %0, %c1_i32_0 : i32
    %c3_i32 = arith.constant 3 : i32
    %2 = arith.minsi %1, %c3_i32 : i32
    %c0_i32 = arith.constant 0 : i32
    %c0_i32_1 = arith.constant 0 : i32
    return %2, %c0_i32 : i32, i32
  }
  func.func @transform_3(%arg0: i32) -> (i32, i32) {
    %c0_i32 = arith.constant 0 : i32
    %c0_i32_0 = arith.constant 0 : i32
    %c0_i32_1 = arith.constant 0 : i32
    return %c0_i32, %c0_i32_0 : i32, i32
  }
  func.func @transform_4(%arg0: i32) -> (i32, i32) {
    %c0_i32 = arith.constant 0 : i32
    %c0_i32_0 = arith.constant 0 : i32
    %c0_i32_1 = arith.constant 0 : i32
    return %c0_i32, %c0_i32_0 : i32, i32
  }
  func.func @transform_5(%arg0: i32) -> (i32, i32) {
    %c0_i32 = arith.constant 0 : i32
    %c0_i32_0 = arith.constant 0 : i32
    %c0_i32_1 = arith.constant 0 : i32
    return %c0_i32, %c0_i32_0 : i32, i32
  }
  func.func @transform_6(%arg0: i32) -> (i32, i32) {
    %c0_i32 = arith.constant 0 : i32
    %c0_i32_0 = arith.constant 0 : i32
    %c0_i32_1 = arith.constant 0 : i32
    return %c0_i32, %c0_i32_0 : i32, i32
  }
  func.func @transform_7(%arg0: i32) -> (i32, i32) {
    %c0_i32 = arith.constant 0 : i32
    %c0_i32_0 = arith.constant 0 : i32
    return %arg0, %c0_i32 : i32, i32
  }
  func.func @transform_8(%arg0: i32) -> (i32, i32) {
    %c0_i32 = arith.constant 0 : i32
    %c0_i32_0 = arith.constant 0 : i32
    %c0_i32_1 = arith.constant 0 : i32
    return %c0_i32, %c0_i32_0 : i32, i32
  }
  func.func @transform_9(%arg0: i32) -> (i32, i32) {
    %c0_i32 = arith.constant 0 : i32
    %c0_i32_0 = arith.constant 0 : i32
    %c0_i32_1 = arith.constant 0 : i32
    return %c0_i32, %c0_i32_0 : i32, i32
  }
}

module attributes {stable_mosaic.version = 11 : i64} {
  func.func @_pass3_kernel(%arg0: i32, %arg1: memref<8x128xf32, #tpu.memory_space<vmem>>, %arg2: memref<128x128xbf16, #tpu.memory_space<vmem>>, %arg3: memref<2x128xf32, #tpu.memory_space<vmem>>, %arg4: memref<8x128xf32, #tpu.memory_space<vmem>>, %arg5: memref<1x128xf32, #tpu.memory_space<vmem>>, %arg6: memref<1x128xf32, #tpu.memory_space<vmem>>) attributes {dimension_semantics = [#tpu.dimension_semantics<arbitrary>], iteration_bounds = array<i64: 4>, scalar_prefetch = 0 : i64, scratch_operands = 0 : i64, tpu.core_type = #tpu.core_type<tc>, window_params = [{transform_indices = @transform_0, window_bounds = array<i64: 8, 128>}, {pipeline_mode = #tpu.pipeline_mode<synchronous>, transform_indices = @transform_1, window_bounds = array<i64: 128, 128>}, {pipeline_mode = #tpu.pipeline_mode<synchronous>, transform_indices = @transform_2, window_bounds = array<i64: 2, 128>}, {transform_indices = @transform_3, window_bounds = array<i64: 8, 128>}, {pipeline_mode = #tpu.pipeline_mode<synchronous>, transform_indices = @transform_4, window_bounds = array<i64: 1, 128>}, {pipeline_mode = #tpu.pipeline_mode<synchronous>, transform_indices = @transform_5, window_bounds = array<i64: 1, 128>}]} {
    %c0_i32 = arith.constant 0 : i32
    %0 = arith.cmpi eq, %arg0, %c0_i32 : i32
    %1 = arith.extui %0 : i1 to i32
    %c0_i32_0 = arith.constant 0 : i32
    %2 = arith.cmpi ne, %1, %c0_i32_0 : i32
    scf.if %2 {
      %cst_20 = arith.constant 0.000000e+00 : f32
      %27 = vector.broadcast %cst_20 : f32 to vector<1x128xf32>
      %c0_21 = arith.constant 0 : index
      %c0_22 = arith.constant 0 : index
      %28 = vector.load %arg5[%c0_21, %c0_22] : memref<1x128xf32, #tpu.memory_space<vmem>>, vector<1x128xf32>
      tpu.vector_store %arg5[%c0_21, %c0_22], %27 {strides = array<i32>} : memref<1x128xf32, #tpu.memory_space<vmem>>, vector<1x128xf32>,
      %cst_23 = arith.constant 0.000000e+00 : f32
      %29 = vector.broadcast %cst_23 : f32 to vector<1x128xf32>
      %c0_24 = arith.constant 0 : index
      %c0_25 = arith.constant 0 : index
      %30 = vector.load %arg6[%c0_24, %c0_25] : memref<1x128xf32, #tpu.memory_space<vmem>>, vector<1x128xf32>
      tpu.vector_store %arg6[%c0_24, %c0_25], %29 {strides = array<i32>} : memref<1x128xf32, #tpu.memory_space<vmem>>, vector<1x128xf32>,
    } else {
    }
    %c0 = arith.constant 0 : index
    %c0_1 = arith.constant 0 : index
    %3 = vector.load %arg1[%c0, %c0_1] : memref<8x128xf32, #tpu.memory_space<vmem>>, vector<8x128xf32>
    %c0_2 = arith.constant 0 : index
    %c0_3 = arith.constant 0 : index
    %4 = vector.load %arg3[%c0_2, %c0_3] : memref<2x128xf32, #tpu.memory_space<vmem>>, vector<1x128xf32>
    %5 = vector.broadcast %4 : vector<1x128xf32> to vector<8x128xf32>
    %6 = arith.mulf %3, %5 : vector<8x128xf32>
    %c1 = arith.constant 1 : index
    %c0_4 = arith.constant 0 : index
    %7 = vector.load %arg3[%c1, %c0_4] : memref<2x128xf32, #tpu.memory_space<vmem>>, vector<1x128xf32>
    %8 = vector.broadcast %7 : vector<1x128xf32> to vector<8x128xf32>
    %9 = arith.addf %6, %8 : vector<8x128xf32>
    %cst = arith.constant 0.000000e+00 : f32
    %10 = vector.broadcast %cst : f32 to vector<8x128xf32>
    %11 = arith.maximumf %9, %10 : vector<8x128xf32>
    %12 = arith.truncf %11 : vector<8x128xf32> to vector<8x128xbf16>
    %c0_5 = arith.constant 0 : index
    %c0_6 = arith.constant 0 : index
    %13 = vector.load %arg2[%c0_5, %c0_6] : memref<128x128xbf16, #tpu.memory_space<vmem>>, vector<128x128xbf16>
    %cst_7 = arith.constant dense<0.000000e+00> : vector<8x128xf32>
    %14 = tpu.matmul %12, %13, %cst_7 {dimension_numbers = #tpu.dot_dimension_numbers<[1], [0], [0], [1], [0, 0, 1, 1], [], []>} : vector<8x128xbf16>, vector<128x128xbf16>, vector<8x128xf32> -> vector<8x128xf32>
    %c0_8 = arith.constant 0 : index
    %c0_9 = arith.constant 0 : index
    %15 = vector.load %arg4[%c0_8, %c0_9] : memref<8x128xf32, #tpu.memory_space<vmem>>, vector<8x128xf32>
    tpu.vector_store %arg4[%c0_8, %c0_9], %14 {strides = array<i32>} : memref<8x128xf32, #tpu.memory_space<vmem>>, vector<8x128xf32>,
    %c0_10 = arith.constant 0 : index
    %c0_11 = arith.constant 0 : index
    %16 = vector.load %arg5[%c0_10, %c0_11] : memref<1x128xf32, #tpu.memory_space<vmem>>, vector<1x128xf32>
    %cst_12 = arith.constant dense<0.000000e+00> : vector<128xf32>
    %17 = vector.multi_reduction <add>, %14, %cst_12 [0] : vector<8x128xf32> to vector<128xf32>
    %18 = vector.shape_cast %17 : vector<128xf32> to vector<1x128xf32>
    %19 = arith.addf %16, %18 : vector<1x128xf32>
    %c0_13 = arith.constant 0 : index
    %c0_14 = arith.constant 0 : index
    %20 = vector.load %arg5[%c0_13, %c0_14] : memref<1x128xf32, #tpu.memory_space<vmem>>, vector<1x128xf32>
    tpu.vector_store %arg5[%c0_13, %c0_14], %19 {strides = array<i32>} : memref<1x128xf32, #tpu.memory_space<vmem>>, vector<1x128xf32>,
    %c0_15 = arith.constant 0 : index
    %c0_16 = arith.constant 0 : index
    %21 = vector.load %arg6[%c0_15, %c0_16] : memref<1x128xf32, #tpu.memory_space<vmem>>, vector<1x128xf32>
    %22 = arith.mulf %14, %14 : vector<8x128xf32>
    %cst_17 = arith.constant dense<0.000000e+00> : vector<128xf32>
    %23 = vector.multi_reduction <add>, %22, %cst_17 [0] : vector<8x128xf32> to vector<128xf32>
    %24 = vector.shape_cast %23 : vector<128xf32> to vector<1x128xf32>
    %25 = arith.addf %21, %24 : vector<1x128xf32>
    %c0_18 = arith.constant 0 : index
    %c0_19 = arith.constant 0 : index
    %26 = vector.load %arg6[%c0_18, %c0_19] : memref<1x128xf32, #tpu.memory_space<vmem>>, vector<1x128xf32>
    tpu.vector_store %arg6[%c0_18, %c0_19], %25 {strides = array<i32>} : memref<1x128xf32, #tpu.memory_space<vmem>>, vector<1x128xf32>,
    return
  }
  func.func @transform_0(%arg0: i32) -> (i32, i32) {
    %c0_i32 = arith.constant 0 : i32
    %c0_i32_0 = arith.constant 0 : i32
    return %arg0, %c0_i32 : i32, i32
  }
  func.func @transform_1(%arg0: i32) -> (i32, i32) {
    %c0_i32 = arith.constant 0 : i32
    %c0_i32_0 = arith.constant 0 : i32
    %c0_i32_1 = arith.constant 0 : i32
    return %c0_i32, %c0_i32_0 : i32, i32
  }
  func.func @transform_2(%arg0: i32) -> (i32, i32) {
    %c0_i32 = arith.constant 0 : i32
    %c0_i32_0 = arith.constant 0 : i32
    %c0_i32_1 = arith.constant 0 : i32
    return %c0_i32, %c0_i32_0 : i32, i32
  }
  func.func @transform_3(%arg0: i32) -> (i32, i32) {
    %c0_i32 = arith.constant 0 : i32
    %c0_i32_0 = arith.constant 0 : i32
    return %arg0, %c0_i32 : i32, i32
  }
  func.func @transform_4(%arg0: i32) -> (i32, i32) {
    %c0_i32 = arith.constant 0 : i32
    %c0_i32_0 = arith.constant 0 : i32
    %c0_i32_1 = arith.constant 0 : i32
    return %c0_i32, %c0_i32_0 : i32, i32
  }
  func.func @transform_5(%arg0: i32) -> (i32, i32) {
    %c0_i32 = arith.constant 0 : i32
    %c0_i32_0 = arith.constant 0 : i32
    %c0_i32_1 = arith.constant 0 : i32
    return %c0_i32, %c0_i32_0 : i32, i32
  }
}

module attributes {stable_mosaic.version = 11 : i64} {
  func.func @_pass4_kernel(%arg0: i32, %arg1: memref<8x128xf32, #tpu.memory_space<vmem>>, %arg2: memref<8x128xf32, #tpu.memory_space<vmem>>, %arg3: memref<2x128xf32, #tpu.memory_space<vmem>>, %arg4: memref<8x128xf32, #tpu.memory_space<vmem>>) attributes {dimension_semantics = [#tpu.dimension_semantics<parallel>], iteration_bounds = array<i64: 4>, scalar_prefetch = 0 : i64, scratch_operands = 0 : i64, tpu.core_type = #tpu.core_type<tc>, window_params = [{transform_indices = @transform_0, window_bounds = array<i64: 8, 128>}, {transform_indices = @transform_1, window_bounds = array<i64: 8, 128>}, {pipeline_mode = #tpu.pipeline_mode<synchronous>, transform_indices = @transform_2, window_bounds = array<i64: 2, 128>}, {transform_indices = @transform_3, window_bounds = array<i64: 8, 128>}]} {
    %c0 = arith.constant 0 : index
    %c0_0 = arith.constant 0 : index
    %0 = vector.load %arg1[%c0, %c0_0] : memref<8x128xf32, #tpu.memory_space<vmem>>, vector<8x128xf32>
    %c0_1 = arith.constant 0 : index
    %c0_2 = arith.constant 0 : index
    %1 = vector.load %arg3[%c0_1, %c0_2] : memref<2x128xf32, #tpu.memory_space<vmem>>, vector<1x128xf32>
    %2 = vector.broadcast %1 : vector<1x128xf32> to vector<8x128xf32>
    %3 = arith.mulf %0, %2 : vector<8x128xf32>
    %c1 = arith.constant 1 : index
    %c0_3 = arith.constant 0 : index
    %4 = vector.load %arg3[%c1, %c0_3] : memref<2x128xf32, #tpu.memory_space<vmem>>, vector<1x128xf32>
    %5 = vector.broadcast %4 : vector<1x128xf32> to vector<8x128xf32>
    %6 = arith.addf %3, %5 : vector<8x128xf32>
    %c0_4 = arith.constant 0 : index
    %c0_5 = arith.constant 0 : index
    %7 = vector.load %arg2[%c0_4, %c0_5] : memref<8x128xf32, #tpu.memory_space<vmem>>, vector<8x128xf32>
    %8 = arith.addf %6, %7 : vector<8x128xf32>
    %cst = arith.constant 0.000000e+00 : f32
    %9 = vector.broadcast %cst : f32 to vector<8x128xf32>
    %10 = arith.maximumf %8, %9 : vector<8x128xf32>
    %c0_6 = arith.constant 0 : index
    %c0_7 = arith.constant 0 : index
    %11 = vector.load %arg4[%c0_6, %c0_7] : memref<8x128xf32, #tpu.memory_space<vmem>>, vector<8x128xf32>
    tpu.vector_store %arg4[%c0_6, %c0_7], %10 {strides = array<i32>} : memref<8x128xf32, #tpu.memory_space<vmem>>, vector<8x128xf32>,
    return
  }
  func.func @transform_0(%arg0: i32) -> (i32, i32) {
    %c0_i32 = arith.constant 0 : i32
    %c0_i32_0 = arith.constant 0 : i32
    return %arg0, %c0_i32 : i32, i32
  }
  func.func @transform_1(%arg0: i32) -> (i32, i32) {
    %c0_i32 = arith.constant 0 : i32
    %c0_i32_0 = arith.constant 0 : i32
    return %arg0, %c0_i32 : i32, i32
  }
  func.func @transform_2(%arg0: i32) -> (i32, i32) {
    %c0_i32 = arith.constant 0 : i32
    %c0_i32_0 = arith.constant 0 : i32
    %c0_i32_1 = arith.constant 0 : i32
    return %c0_i32, %c0_i32_0 : i32, i32
  }
  func.func @transform_3(%arg0: i32) -> (i32, i32) {
    %c0_i32 = arith.constant 0 : i32
    %c0_i32_0 = arith.constant 0 : i32
    return %arg0, %c0_i32 : i32, i32
  }
}

</mosaic_0001>

<bundles_post_ra>
// kernel: bottleneck_pallas.6
= control target key start
LH: loop header
LB: loop body
LE: loop exit
PB: predicated region body
PF: predicated region fallthrough
CT: control target
= control target key end

     0   :  { %s535_s18 = smov 0   ;;  %s603_s0 = inlined_call_operand.vmem [shape: f32[32,128], index: 0, kind: input, shape index: {}]   ;;  %s604_s1 = inlined_call_operand.vmem [shape: bf16[128,128], index: 1, kind: input, shape index: {}]   ;;  %s605_s2 = inlined_call_operand.vmem [shape: f32[2,128], index: 2, kind: input, shape index: {}]   ;;  %s606_s3 = inlined_call_operand.vmem [shape: f32[32,128], index: 3, kind: output, shape index: {0}]   ;;  %s607_s4 = inlined_call_operand.vmem [shape: f32[1,128], index: 4, kind: output, shape index: {1}]   ;;  %s608_s5 = inlined_call_operand.vmem [shape: f32[1,128], index: 5, kind: output, shape index: {2}]  }
   0x1 LB: > { %s426_s19 = sadd.s32 4294967295, %s500_s18   ;;  %p430_p0 = scmp.ge.s32.totalorder %s500_s18, 1  ;;  %s500_s18 = sphi %s535_s18, %s16_s18  }
   0x2   : > { %p181_p1 = scmp.lt.s32.totalorder %s500_s18, 5 }
   0x4   : > { %p182_p2 = pnand %p430_p0, %p181_p1 }
   0x5   : > { %p207_p3 = scmp.lt.s32.totalorder (!%p182_p2), %s426_s19, 3  ;;  %p433_p4 = scmp.ne.s32.totalorder (!%p182_p2), %s426_s19, 0 }
   0x6   : > { %185 = sbr.rel (%p182_p2) target bundleno = 283 (0x11b), region = 32 }
   0xd   : > { %s208_s20 = scalar_select %p207_p3, %s426_s19, 3 }
   0xe   : > { %219 = sbr.rel (%p433_p4) target bundleno = 21 (0x15), region = 36  ;;  %v502_v0 = vmov (!%p433_p4), 0.0  }
   0xf   : > { %s431_s21 = sshll.u32 %s208_s20, 3  ;;  %220 = vst [vmem:[%s607_s4] sm:$0x1] (!%p433_p4), %v502_v0  ;;  %221 = vst [vmem:[%s608_s5] sm:$0x1] (!%p433_p4), %v502_v0 }
  0x10   : > { %s210_s24 = scalar_lea.vmem %s603_s0, %s431_s21  ;;  %s549_s27 = scalar_lea.vmem %s606_s3, %s431_s21 }
  0x15 PF: > { %v486_v1 = vld [vmem:[%s604_s1] sm:$0xff]   ;;  %v503_v2 = vmov 0.0   ;;  %v487_v3 = vld [vmem:[%s604_s1 + $0x8] sm:$0xff]   ;;  %vm504_vm0 = vmmov 0   ;;  %v488_v4 = vld [vmem:[%s604_s1 + $0x10] sm:$0xff]  }
  0x16   : > { %455 = vmatprep.subr.bf16.mxu0 %v503_v2  ;;  %471 = vmatprep.mubr.msk.bf16.mxu0 %vm504_vm0, %v503_v2  ;;  %v489_v5 = vld [vmem:[%s604_s1 + $0x18] sm:$0xff]   ;;  %v490_v6 = vld [vmem:[%s604_s1 + $0x20] sm:$0xff]   ;;  %v491_v10 = vld [vmem:[%s604_s1 + $0x28] sm:$0xff]  }
  0x17   : > { %456 = vmatpush3.bf16.msra.mxu0 %v486_v1  ;;  %v222_v7 = vld [vmem:[%s210_s24] sm:$0xff]  ;;  %v492_v13 = vld [vmem:[%s604_s1 + $0x30] sm:$0xff]   ;;  %v493_v15 = vld [vmem:[%s604_s1 + $0x38] sm:$0xff]  }
  0x18   : > { %457 = vmatprep.subr.bf16.mxu0 %v503_v2  ;;  %v434_v8 = vld [vmem:[%s605_s2] ss:$0 sm:$0xff]  ;;  %v435_v11 = vld [vmem:[%s605_s2 + $0x1] ss:$0 sm:$0xff] }
  0x19   : > { %v228_v9 = vmul.f32 %v434_v8, %v222_v7  ;;  %v342_v31 = vld [vmem:[%s607_s4] sm:$0x1] }
  0x1a   : > { %v351_v34 = vld [vmem:[%s608_s5] sm:$0x1] }
  0x1b   : > { %458 = vmatpush3.bf16.msra.mxu0 %v487_v3  ;;  %v234_v12 = vadd.f32 %v435_v11, %v228_v9 }
  0x1c   : > { %459 = vmatprep.subr.bf16.mxu0 %v503_v2 }
  0x1d   : > { %v235_v14 = vmax.f32 %v234_v12, 0.0 }
  0x1f   : > { %460 = vmatpush3.bf16.msra.mxu0 %v488_v4  ;;  %v236_v16 = vpack.c.bf16 %v235_v14, %v235_v14 }
  0x20   : > { %461 = vmatprep.subr.bf16.mxu0 %v503_v2 }
  0x23   : > { %462 = vmatpush3.bf16.msra.mxu0 %v489_v5 }
  0x24   : > { %463 = vmatprep.subr.bf16.mxu0 %v503_v2 }
  0x27   : > { %464 = vmatpush3.bf16.msra.mxu0 %v490_v6 }
  0x28   : > { %465 = vmatprep.subr.bf16.mxu0 %v503_v2 }
  0x2b   : > { %466 = vmatpush3.bf16.msra.mxu0 %v491_v10 }
  0x2c   : > { %467 = vmatprep.subr.bf16.mxu0 %v503_v2 }
  0x2f   : > { %468 = vmatpush3.bf16.msra.mxu0 %v492_v13 }
  0x30   : > { %469 = vmatprep.subr.bf16.mxu0 %v503_v2 }
  0x33   : > { %470 = vmatpush3.bf16.msra.mxu0 %v493_v15 }
  0x36   : > { %472 = vmatmul.mubr.bf16.vlgmr.msra.gmra.mrb[0].mxu0 %v236_v16 }
 0x109   : > { %v335_v17 = vpop.f32.mrb[0].mxu0 }
 0x10a   : > { %341 = vst [vmem:[%s549_s27] sm:$0xff] %v335_v17  ;;  %v343_v18 = vrot.slane %v335_v17, 4  ;;  %v352_v19 = vmul.f32 %v335_v17, %v335_v17  ;;  %v473_v20 = vpop.f32.mrb[1].mxu0 }
 0x10b   : > { %v338_v21 = vpop.f32.mrb[2].mxu0 }
 0x10c   : > { %v344_v22 = vadd.f32 %v343_v18, %v335_v17  ;;  %v353_v23 = vrot.slane %v352_v19, 4  ;;  %v474_v24 = vpop.f32.mrb[3].mxu0 }
 0x10e   : > { %v345_v25 = vrot.slane %v344_v22, 2  ;;  %v354_v26 = vadd.f32 %v353_v23, %v352_v19 }
 0x110   : > { %v346_v27 = vadd.f32 %v345_v25, %v344_v22  ;;  %v355_v28 = vrot.slane %v354_v26, 2 }
 0x112   : > { %v347_v29 = vrot.slane %v346_v27, 1  ;;  %v356_v30 = vadd.f32 %v355_v28, %v354_v26 }
 0x114   : > { %v348_v32 = vadd.f32 %v347_v29, %v346_v27  ;;  %v357_v33 = vrot.slane %v356_v30, 1 }
 0x116   : > { %v349_v35 = vadd.f32 %v348_v32, %v342_v31  ;;  %v358_v36 = vadd.f32 %v357_v33, %v356_v30 }
 0x118   : > { %350 = vst [vmem:[%s607_s4] sm:$0x1] %v349_v35  ;;  %v359_v37 = vadd.f32 %v358_v36, %v351_v34 }
 0x11a   : > { %360 = vst [vmem:[%s608_s5] sm:$0x1] %v359_v37 }
 0x11b PF: > { %s16_s18 = sadd.s32 1, %s500_s18  }
 0x11c   : > { %p13_p5 = scmp.ge.s32.totalorder %s16_s18, 6  }
 0x11e   :  { %15 = sbr.rel (!%p13_p5) target bundleno = 1 (0x1), region = 82 }

// kernel: bottleneck_pallas.4
= control target key start
LH: loop header
LB: loop body
LE: loop exit
PB: predicated region body
PF: predicated region fallthrough
CT: control target
= control target key end

     0   :  { %s488_s15 = smov 0   ;;  %s553_s0 = inlined_call_operand.vmem [shape: f32[32,128], index: 0, kind: input, shape index: {}]   ;;  %s554_s1 = inlined_call_operand.vmem [shape: bf16[128,128], index: 1, kind: input, shape index: {}]   ;;  %s555_s2 = inlined_call_operand.vmem [shape: f32[32,128], index: 2, kind: output, shape index: {0}]   ;;  %s556_s3 = inlined_call_operand.vmem [shape: f32[1,128], index: 3, kind: output, shape index: {1}]   ;;  %s557_s4 = inlined_call_operand.vmem [shape: f32[1,128], index: 4, kind: output, shape index: {2}]  }
   0x1 LB: > { %s386_s16 = sadd.s32 4294967295, %s458_s15   ;;  %p390_p0 = scmp.ge.s32.totalorder %s458_s15, 1  ;;  %s458_s15 = sphi %s488_s15, %s15_s15  }
   0x2   : > { %p156_p1 = scmp.lt.s32.totalorder %s458_s15, 5 }
   0x4   : > { %p157_p2 = pnand %p390_p0, %p156_p1 }
   0x5   : > { %p180_p3 = scmp.lt.s32.totalorder (!%p157_p2), %s386_s16, 3  ;;  %p393_p4 = scmp.ne.s32.totalorder (!%p157_p2), %s386_s16, 0 }
   0x6   : > { %160 = sbr.rel (%p157_p2) target bundleno = 283 (0x11b), region = 28 }
   0xd   : > { %s181_s17 = scalar_select %p180_p3, %s386_s16, 3 }
   0xe   : > { %192 = sbr.rel (%p393_p4) target bundleno = 21 (0x15), region = 32  ;;  %v460_v0 = vmov (!%p393_p4), 0.0  }
   0xf   : > { %s391_s18 = sshll.u32 %s181_s17, 3  ;;  %193 = vst [vmem:[%s556_s3] sm:$0x1] (!%p393_p4), %v460_v0  ;;  %194 = vst [vmem:[%s557_s4] sm:$0x1] (!%p393_p4), %v460_v0 }
  0x10   : > { %s499_s21 = scalar_lea.vmem %s553_s0, %s391_s18  ;;  %s504_s24 = scalar_lea.vmem %s555_s2, %s391_s18 }
  0x15 PF: > { %v444_v1 = vld [vmem:[%s554_s1] sm:$0xff]   ;;  %v461_v2 = vmov 0.0   ;;  %v445_v3 = vld [vmem:[%s554_s1 + $0x8] sm:$0xff]   ;;  %vm462_vm0 = vmmov 0   ;;  %v446_v4 = vld [vmem:[%s554_s1 + $0x10] sm:$0xff]  }
  0x16   : > { %413 = vmatprep.subr.bf16.mxu0 %v461_v2  ;;  %429 = vmatprep.mubr.msk.bf16.mxu0 %vm462_vm0, %v461_v2  ;;  %v447_v5 = vld [vmem:[%s554_s1 + $0x18] sm:$0xff]   ;;  %v448_v6 = vld [vmem:[%s554_s1 + $0x20] sm:$0xff]   ;;  %v449_v7 = vld [vmem:[%s554_s1 + $0x28] sm:$0xff]  }
  0x17   : > { %414 = vmatpush3.bf16.msra.mxu0 %v444_v1  ;;  %v450_v8 = vld [vmem:[%s554_s1 + $0x30] sm:$0xff]   ;;  %v451_v9 = vld [vmem:[%s554_s1 + $0x38] sm:$0xff]   ;;  %v195_v10 = vld [vmem:[%s499_s21] sm:$0xff] }
  0x18   : > { %415 = vmatprep.subr.bf16.mxu0 %v461_v2  ;;  %v196_v11 = vpack.c.bf16 %v195_v10, %v195_v10  ;;  %v302_v26 = vld [vmem:[%s556_s3] sm:$0x1] }
  0x19   : > { %v311_v29 = vld [vmem:[%s557_s4] sm:$0x1] }
  0x1b   : > { %416 = vmatpush3.bf16.msra.mxu0 %v445_v3 }
  0x1c   : > { %417 = vmatprep.subr.bf16.mxu0 %v461_v2 }
  0x1f   : > { %418 = vmatpush3.bf16.msra.mxu0 %v446_v4 }
  0x20   : > { %419 = vmatprep.subr.bf16.mxu0 %v461_v2 }
  0x23   : > { %420 = vmatpush3.bf16.msra.mxu0 %v447_v5 }
  0x24   : > { %421 = vmatprep.subr.bf16.mxu0 %v461_v2 }
  0x27   : > { %422 = vmatpush3.bf16.msra.mxu0 %v448_v6 }
  0x28   : > { %423 = vmatprep.subr.bf16.mxu0 %v461_v2 }
  0x2b   : > { %424 = vmatpush3.bf16.msra.mxu0 %v449_v7 }
  0x2c   : > { %425 = vmatprep.subr.bf16.mxu0 %v461_v2 }
  0x2f   : > { %426 = vmatpush3.bf16.msra.mxu0 %v450_v8 }
  0x30   : > { %427 = vmatprep.subr.bf16.mxu0 %v461_v2 }
  0x33   : > { %428 = vmatpush3.bf16.msra.mxu0 %v451_v9 }
  0x36   : > { %430 = vmatmul.mubr.bf16.vlgmr.msra.gmra.mrb[0].mxu0 %v196_v11 }
 0x109   : > { %v295_v12 = vpop.f32.mrb[0].mxu0 }
 0x10a   : > { %301 = vst [vmem:[%s504_s24] sm:$0xff] %v295_v12  ;;  %v303_v13 = vrot.slane %v295_v12, 4  ;;  %v312_v14 = vmul.f32 %v295_v12, %v295_v12  ;;  %v431_v15 = vpop.f32.mrb[1].mxu0 }
 0x10b   : > { %v298_v16 = vpop.f32.mrb[2].mxu0 }
 0x10c   : > { %v304_v17 = vadd.f32 %v303_v13, %v295_v12  ;;  %v313_v18 = vrot.slane %v312_v14, 4  ;;  %v432_v19 = vpop.f32.mrb[3].mxu0 }
 0x10e   : > { %v305_v20 = vrot.slane %v304_v17, 2  ;;  %v314_v21 = vadd.f32 %v313_v18, %v312_v14 }
 0x110   : > { %v306_v22 = vadd.f32 %v305_v20, %v304_v17  ;;  %v315_v23 = vrot.slane %v314_v21, 2 }
 0x112   : > { %v307_v24 = vrot.slane %v306_v22, 1  ;;  %v316_v25 = vadd.f32 %v315_v23, %v314_v21 }
 0x114   : > { %v308_v27 = vadd.f32 %v307_v24, %v306_v22  ;;  %v317_v28 = vrot.slane %v316_v25, 1 }
 0x116   : > { %v309_v30 = vadd.f32 %v308_v27, %v302_v26  ;;  %v318_v31 = vadd.f32 %v317_v28, %v316_v25 }
 0x118   : > { %310 = vst [vmem:[%s556_s3] sm:$0x1] %v309_v30  ;;  %v319_v32 = vadd.f32 %v318_v31, %v311_v29 }
 0x11a   : > { %320 = vst [vmem:[%s557_s4] sm:$0x1] %v319_v32 }
 0x11b PF: > { %s15_s15 = sadd.s32 1, %s458_s15  }
 0x11c   : > { %p12_p5 = scmp.ge.s32.totalorder %s15_s15, 6  }
 0x11e   :  { %14 = sbr.rel (!%p12_p5) target bundleno = 1 (0x1), region = 78 }

// kernel: bottleneck_pallas.7
= control target key start
LH: loop header
LB: loop body
LE: loop exit
PB: predicated region body
PF: predicated region fallthrough
CT: control target
= control target key end

     0   :  { %8 = vsyncpa [#allocation3], 0  ;;  %s531_s0 = inlined_call_operand.vmem [shape: f32[32,128], index: 0, kind: input, shape index: {}]   ;;  %s532_s1 = inlined_call_operand.vmem [shape: f32[32,128], index: 1, kind: input, shape index: {}]   ;;  %s533_s2 = inlined_call_operand.vmem [shape: f32[2,128], index: 2, kind: input, shape index: {}]   ;;  %s534_s3 = inlined_call_operand.hbm [shape: f32[32,128], index: 3, kind: output, shape index: {}]  }
   0x1   :  { %10 = vsyncpa [#allocation3 + $0x1], 0  ;;  %s422_s12 = smov 0   ;;  %s424_s13 = smov 0  }
   0x2   :  { %s426_s14 = smov 0   ;;  %s428_s15 = smov 0  }
   0x3 LB: > { %s443_s16 = sadd.s32 4294967295, %s399_s15   ;;  %s285_s17 = sadd.s32 4294967294, %s399_s15   ;;  %s399_s15 = sphi %s428_s15, %s540_s15   ;;  %s395_s14 = sphi %s426_s14, %s539_s14   ;;  %s391_s13 = sphi %s424_s13, %s538_s13   ;;  %s387_s12 = sphi %s422_s12, %s537_s12  }
   0x4   : > { %s447_s18 = sadd.s32 1, %s399_s15   ;;  %s96_s19 = sadd.s32 1, %s395_s14 }
   0x5   : > { %s93_s20 = ssub.s32 %s399_s15, %s447_s18  ;;  %p106_p0 = scmp.ne.s32.totalorder %s395_s14, %s391_s13 }
   0x6   : > { %p94_p1 = scmp.eq.s32.totalorder %s93_s20, 0  ;;  %p107_p2 = scmp.eq.s32.totalorder %s443_s16, 3 }
   0x7   : > { %p112_p3 = scmp.ne.s32.totalorder %s391_s13, %s387_s12  ;;  %p113_p4 = scmp.eq.s32.totalorder %s285_s17, 3 }
   0x8   : > { %s458_s21 = scalar_select %p94_p1, %s395_s14, %s96_s19  }
   0x9   : > { %p460_p5 = por %p107_p2, %p106_p0  ;;  %p464_p6 = por %p113_p4, %p112_p3 }
   0xa   : > { %p288_p7 = scmp.ge.s32.totalorder %s399_s15, 1  ;;  %p148_p8 = scmp.lt.s32.totalorder %s399_s15, 5 }
   0xc   : > { %p149_p9 = pnand %p288_p7, %p148_p8 }
   0xd   : > { %p175_p10 = scmp.lt.s32.totalorder (!%p149_p9), %s443_s16, 3  ;;  %s172_s24 = sand.u32 (!%p149_p9), 1, %s391_s13   ;;  %v292_v0 = vld [vmem:[%s533_s2] ss:$0 sm:$0xff] (!%p149_p9)  ;;  %v293_v2 = vld [vmem:[%s533_s2 + $0x1] ss:$0 sm:$0xff] (!%p149_p9) }
   0xe   : > { %152 = sbr.rel (%p149_p9) target bundleno = 48 (0x30), region = 32  ;;  %s289_s26 = sshll.u32 (!%p149_p9), %s172_s24, 3 }
   0xf   : > { %s174_s11 = scalar_lea.vmem (!%p149_p9), [#allocation2], %s289_s26  ;;  %s295_s19 = sshll.u32 (!%p149_p9), %s443_s16, 7 }
  0x10   : > { %s214_s17 = sshll.u32 (!%p149_p9), %s174_s11, 4  ;;  %s201_s28 = scalar_lea.sflag (!%p149_p9), [#allocation3], %s172_s24  ;;  %s486_s17 = int_to_ptr.vmem [resolvable:$true] %s214_s17 }
  0x11   : > { %s337_s29 = scalar_lea.vmem (!%p149_p9), %s486_s17, 128 }
  0x12   : > { %p338_p11 = scmp.ne.s32.totalorder (!%p149_p9), %s486_s17, %s337_s29 }
  0x14   : > { %p339_p12 = pnand (!%p149_p9), %p338_p11, %p460_p5 }
  0x15   : > { %s176_s25 = scalar_select %p175_p10, %s443_s16, 3 }
  0x16   : > { %p340_p13 = pneg %p339_p12  ;;  %s401_s16 = smov [#allocation2]  }
  0x17   : > { %s290_s27 = sshll.u32 %s176_s25, 3  ;;  %s341_s26 = sshll.u32 %s401_s16, 4  ;;  %s342_s26 = int_to_ptr.vmem [resolvable:$false] %s341_s26 }
  0x18   : > { %s178_s5 = scalar_lea.vmem %s531_s0, %s290_s27  ;;  %s182_s8 = scalar_lea.vmem %s532_s1, %s290_s27 }
  0x19   : > { %v183_v1 = vld [vmem:[%s178_s5] sm:$0xff]  ;;  %s491_s27 = scalar_lea.hbm %s534_s3, %s295_s19  ;;  %s343_s30 = scalar_lea.vmem %s342_s26, 256 }
  0x1a   : > { %v189_v3 = vmul.f32 %v292_v0, %v183_v1  ;;  %v196_v4 = vld [vmem:[%s182_s8] sm:$0xff]  ;;  %p344_p0 = scmp.lt.s32.totalorder %s486_s17, %s342_s26  ;;  %p345_p1 = scmp.lt.s32.totalorder %s343_s30, %s337_s29 }
  0x1c   : > { %v195_v5 = vadd.f32 %v293_v2, %v189_v3  ;;  %p346_p2 = por %p345_p1, %p344_p0 }
  0x1e   : > { %v197_v6 = vadd.f32 %v196_v4, %v195_v5  ;;  %p347_p3 = pnand %p346_p2, %p340_p13 }
  0x20   : > { %v198_v7 = vmax.f32 %v197_v6, 0.0 }
  0x22   : > { %199 = vst [vmem:[%s174_s11] sm:$0xff] %v198_v7 }
  0x23   : > { %350 = shalt.err (!%p347_p3)
}
  0x24   : > { %s351_s24 = scalar_lea.hbm %s491_s27, 128  ;;  %s355_s6 = scalar_lea.hbm %s534_s3, 512 }
  0x25   : > { %p352_p4 = scmp.ne.s32.totalorder %s491_s27, %s351_s24  ;;  %p356_p9 = scmp.lt.u32.totalorder %s491_s27, %s534_s3 }
  0x26   : > { %p357_p10 = scmp.lt.u32.totalorder %s355_s6, %s351_s24  ;;  %p359_p12 = scmp.lt.u32.totalorder %s351_s24, %s491_s27 }
  0x27   : > { %p353_p7 = pnand %p352_p4, %p460_p5 }
  0x28   : > { %p358_p11 = por %p357_p10, %p356_p9 }
  0x29   : > { %p354_p8 = pneg %p353_p7 }
  0x2a   : > { %p360_p13 = por %p359_p12, %p358_p11 }
  0x2c   : > { %p361_p0 = pnand %p360_p13, %p354_p8 }
  0x2e   : > { %364 = shalt.err (!%p361_p0)
}
  0x2f   : > { %298 = dma.vmem_to_hbm [thread:$0]  (%p460_p5), %s486_s17, 128, %s491_s27, %s201_s28  }
  0x30 PF: > { %p304_p1 = scmp.ge.s32.totalorder %s399_s15, 2  ;;  %s226_s9 = sand.u32 1, %s387_s12  }
  0x31   : > { %s227_s10 = scalar_lea.sflag [#allocation3], %s226_s9 }
  0x32   : > { %p301_p2 = pnand %p304_p1, %p464_p6 }
  0x34   : > { %382 = dma.done.wait (!%p301_p2), %s227_s10, 128  }
  0x35   : > { %384 = vsyncadd (!%p301_p2), %s227_s10, 4294967168  ;;  %p13_p3 = scmp.ge.s32.totalorder %s447_s18, 6   ;;  %s537_s12 = smov %s391_s13 }
  0x36   : > { %s538_s13 = smov %s395_s14  ;;  %s539_s14 = smov %s458_s21 }
  0x37   : > { %s540_s15 = smov %s447_s18  ;;  %15 = sbr.rel (!%p13_p3) target bundleno = 3 (0x3), region = 70 }
  0x3e   :  { %232 = vsyncpa [#allocation3], 1 }
  0x3f   :  { %234 = vsyncpa [#allocation3 + $0x1], 1 }

// kernel: bottleneck_pallas.5
= control target key start
LH: loop header
LB: loop body
LE: loop exit
PB: predicated region body
PF: predicated region fallthrough
CT: control target
= control target key end

     0   :  { %s1141_s30 = smov 0   ;;  %s1331_s0 = inlined_call_operand.vmem [shape: f32[32,128], index: 0, kind: input, shape index: {}, may-alias: {0,1,2}]   ;;  %s1332_s1 = inlined_call_operand.vmem [shape: f32[32,128], index: 1, kind: input, shape index: {}, may-alias: {0,1,2}]   ;;  %s1333_s2 = inlined_call_operand.vmem [shape: f32[32,128], index: 2, kind: input, shape index: {}, may-alias: {0,1,2}]   ;;  %s1334_s3 = inlined_call_operand.vmem [shape: bf16[128,128], index: 3, kind: input, shape index: {}]   ;;  %s1335_s4 = inlined_call_operand.vmem [shape: bf16[128,128], index: 4, kind: input, shape index: {}]   ;;  %s1336_s5 = inlined_call_operand.vmem [shape: bf16[128,128], index: 5, kind: input, shape index: {}]   ;;  %s1337_s6 = inlined_call_operand.vmem [shape: f32[2,128], index: 6, kind: input, shape index: {}]   ;;  %s1338_s7 = inlined_call_operand.vmem [shape: f32[32,128], index: 7, kind: output, shape index: {0}]   ;;  %s1339_s8 = inlined_call_operand.vmem [shape: f32[1,128], index: 8, kind: output, shape index: {1}]   ;;  %s1340_s9 = inlined_call_operand.vmem [shape: f32[1,128], index: 9, kind: output, shape index: {2}]  }
   0x1 LB: > { %s1147_s10 = sadd.s32 4294967295, %s1086_s30   ;;  %p896_p0 = scmp.ge.s32.totalorder %s1086_s30, 1  ;;  %s1086_s30 = sphi %s1141_s30, %s20_s30  }
   0x2   : > { %p323_p1 = scmp.lt.s32.totalorder %s1086_s30, 5 }
   0x4   : > { %p324_p2 = pnand %p896_p0, %p323_p1 }
   0x5   : > { %p371_p3 = scmp.lt.s32.totalorder (!%p324_p2), %s1147_s10, 3  ;;  %s898_s11 = sadd.s32 (!%p324_p2), 4294967295, %s1147_s10 }
   0x6   : > { %327 = sbr.rel (%p324_p2) target bundleno = 321 (0x141), region = 48  ;;  %p376_p4 = scmp.gt.s32.totalorder (!%p324_p2), %s898_s11, 0 }
   0x7   : > { %p899_p5 = scmp.lt.s32.totalorder (!%p324_p2), %s898_s11, 3  ;;  %s385_s14 = sadd.s32 (!%p324_p2), 1, %s1147_s10 }
   0x8   : > { %p386_p6 = scmp.lt.s32.totalorder (!%p324_p2), %s385_s14, 3  ;;  %p910_p7 = scmp.ne.s32.totalorder (!%p324_p2), %s1147_s10, 0 }
   0xd   : > { %s372_s12 = scalar_select %p371_p3, %s1147_s10, 3 }
   0xe   : > { %s1342_s11 = smov (!%p376_p4, %s898_s11), 0  ;;  %s1346_s14 = smov (!%p386_p6, %s385_s14), 3 }
   0xf   : > { %s897_s13 = sshll.u32 %s372_s12, 3  ;;  %s1344_s11 = smov (!%p899_p5, %s1342_s11), 3  ;;  %v1088_v0 = vmov (!%p910_p7), 0.0  }
  0x10   : > { %s1158_s17 = scalar_lea.vmem %s1331_s0, %s897_s13  ;;  %s904_s18 = sshll.u32 %s1344_s11, 3  ;;  %404 = vst [vmem:[%s1339_s8] sm:$0x1] (!%p910_p7), %v1088_v0  ;;  %405 = vst [vmem:[%s1340_s9] sm:$0x1] (!%p910_p7), %v1088_v0 }
  0x11   : > { %s1163_s21 = scalar_lea.vmem %s1338_s7, %s897_s13  ;;  %s1168_s24 = scalar_lea.vmem %s1332_s1, %s904_s18 }
  0x12   : > { %s1348_s14 = smov (!%p386_p6, %s1346_s14), 3  ;;  %403 = sbr.rel (%p910_p7) target bundleno = 25 (0x19), region = 52 }
  0x13   : > { %s1170_s25 = sshll.u32 %s1348_s14, 3 }
  0x14   : > { %s391_s28 = scalar_lea.vmem %s1333_s2, %s1170_s25 }
  0x19 PF: > { %v1056_v1 = vld [vmem:[%s1334_s3] sm:$0xff]   ;;  %v409_v2 = vlaneseq  ;;  %v1089_v3 = vmov 0.0   ;;  %v1057_v4 = vld [vmem:[%s1334_s3 + $0x8] sm:$0xff]   ;;  %vm1090_vm0 = vmmov 0   ;;  %s911_s19 = sshll.u32 %s1147_s10, 3  ;;  %v1058_v6 = vld [vmem:[%s1334_s3 + $0x10] sm:$0xff]  }
  0x1a   : > { %1000 = vmatprep.subr.bf16.mxu0 %v1089_v3  ;;  %980 = vmatprep.subr.bf16.mxu1 %v1089_v3  ;;  %v443_v8 = vstv %s911_s19  ;;  %v1064_v10 = vld [vmem:[%s1335_s4] sm:$0xff]   ;;  %v1059_v14 = vld [vmem:[%s1334_s3 + $0x18] sm:$0xff]   ;;  %v1066_v21 = vld [vmem:[%s1335_s4 + $0x8] sm:$0xff]   ;;  %vm431_vm5 = vcmask 1040384   ;;  %vm438_vm8 = vcmask 1046528  }
  0x1b   : > { %1001 = vmatpush3.bf16.msra.mxu0 %v1056_v1  ;;  %1016 = vmatprep.mubr.msk.bf16.mxu0 %vm1090_vm0, %v1089_v3  ;;  %v410_v5 = vshrl.u32 %v409_v2, 7  ;;  %v1207_v11 = vld [vmem:[%s1337_s6] sm:$0x1]  ;;  %v1212_v12 = vld [vmem:[%s1337_s6 + $0x1] sm:$0x1]  ;;  %v1068_v26 = vld [vmem:[%s1335_s4 + $0x10] sm:$0xff]  }
  0x1c   : > { %1002 = vmatprep.subr.bf16.mxu0 %v1089_v3  ;;  %996 = vmatprep.mubr.msk.bf16.mxu1 %vm1090_vm0, %v1089_v3  ;;  %v408_v13 = vld [vmem:[%s1158_s17] sm:$0xff]  ;;  %v1061_v27 = vld [vmem:[%s1334_s3 + $0x28] sm:$0xff]   ;;  %v1070_v32 = vld [vmem:[%s1335_s4 + $0x18] sm:$0xff]  }
  0x1d   : > { %v411_v7 = vsub.s32 0, %v410_v5  ;;  %v444_v9 = vadd.s32 %v443_v8, %v410_v5  ;;  %981 = vmatpush3.bf16.msra.mxu1 %v1064_v10  ;;  %v420_v17 = vld [vmem:[%s1168_s24 + $0x7] sm:$0x1]  ;;  %v1062_v34 = vld [vmem:[%s1334_s3 + $0x30] sm:$0xff]   ;;  %v1063_v39 = vld [vmem:[%s1334_s3 + $0x38] sm:$0xff]  }
  0x1e   : > { %982 = vmatprep.subr.bf16.mxu1 %v1089_v3  ;;  %v1060_v22 = vld [vmem:[%s1334_s3 + $0x20] sm:$0xff]   ;;  %v421_v24 = vmul.f32 %v420_v17, %v1207_v11  ;;  %v1074_v41 = vld [vmem:[%s1335_s4 + $0x28] sm:$0xff]   ;;  %v1076_v44 = vld [vmem:[%s1335_s4 + $0x30] sm:$0xff]  }
  0x1f   : > { %1003 = vmatpush3.bf16.msra.mxu0 %v1057_v4  ;;  %v412_v15 = vrot.slane %v1207_v11, %v411_v7  ;;  %v417_v16 = vrot.slane %v1212_v12, %v411_v7  ;;  %v446_v18 = vsub.s32 0, %v444_v9  ;;  %vm445_vm1 = vcmp.lt.s32.totalorder %v444_v9, 0  ;;  %v1072_v37 = vld [vmem:[%s1335_s4 + $0x20] sm:$0xff]   ;;  %v1067_v45 = vld [vmem:[%s1336_s5 + $0x8] sm:$0xff]   ;;  %v1078_v46 = vld [vmem:[%s1335_s4 + $0x38] sm:$0xff]  }
  0x20   : > { %1004 = vmatprep.subr.bf16.mxu0 %v1089_v3  ;;  %v422_v30 = vadd.f32 %v421_v24, %v1212_v12  ;;  %v1065_v43 = vld [vmem:[%s1336_s5] sm:$0xff]   ;;  %v1069_v48 = vld [vmem:[%s1336_s5 + $0x10] sm:$0xff]   ;;  %v1071_v51 = vld [vmem:[%s1336_s5 + $0x18] sm:$0xff]  }
  0x21   : > { %v413_v19 = vmul.f32 %v412_v15, %v408_v13  ;;  %v912_v20 = vmin.u32 %v446_v18, %v444_v9  ;;  %983 = vmatpush3.bf16.msra.mxu1 %v1066_v21  ;;  %v424_v49 = vld [vmem:[%s391_s28] sm:$0x1]  ;;  %v1075_v54 = vld [vmem:[%s1336_s5 + $0x28] sm:$0xff]   ;;  %v1077_v56 = vld [vmem:[%s1336_s5 + $0x30] sm:$0xff]  }
  0x22   : > { %984 = vmatprep.subr.bf16.mxu1 %v1089_v3  ;;  %v423_v35 = vmax.f32 %v422_v30, 0.0  ;;  %v425_v50 = vmul.f32 %v424_v49, %v1207_v11  ;;  %v1073_v53 = vld [vmem:[%s1336_s5 + $0x20] sm:$0xff]   ;;  %v1079_v59 = vld [vmem:[%s1336_s5 + $0x38] sm:$0xff]  }
  0x23   : > { %1005 = vmatpush3.bf16.msra.mxu0 %v1058_v6  ;;  %v418_v23 = vadd.f32 %v417_v16, %v413_v19  ;;  %v449_v25 = vand.u32 15, %v912_v20  ;;  %v782_v17 = vld [vmem:[%s1339_s8] sm:$0x1] }
  0x24   : > { %1006 = vmatprep.subr.bf16.mxu0 %v1089_v3  ;;  %v426_v52 = vadd.f32 %v425_v50, %v1212_v12  ;;  %v791_v20 = vld [vmem:[%s1340_s9] sm:$0x1] }
  0x25   : > { %v450_v28 = vsub.s32 0, %v449_v25  ;;  %v1238_v29 = vmax.f32 %v418_v23, 0.0  ;;  %985 = vmatpush3.bf16.msra.mxu1 %v1068_v26 }
  0x26   : > { %986 = vmatprep.subr.bf16.mxu1 %v1089_v3  ;;  %v427_v55 = vmax.f32 %v426_v52, 0.0 }
  0x27   : > { %1007 = vmatpush3.bf16.msra.mxu0 %v1059_v14  ;;  %v451_v31 = vsel %vm445_vm1, %v450_v28, %v449_v25  ;;  %v429_v36 = vrot.slane %v1238_v29, 7  ;;  %v482_v47 = vpack.c.bf16 %v1238_v29, %v1238_v29  ;;  %v433_v57 = vrot.slane %v1238_v29, 1 }
  0x28   : > { %1008 = vmatprep.subr.bf16.mxu0 %v1089_v3  ;;  %vm452_vm2 = vcmp.ne.s32.totalorder %v451_v31, 0  ;;  %vm453_vm3 = vcmp.lt.s32.totalorder %v451_v31, 0  ;;  %v455_v33 = vadd.s32 16, %v451_v31  ;;  %v436_v58 = vrot.slane %v427_v55, 1 }
  0x29   : > { %vm454_vm4 = vmand %vm453_vm3, %vm452_vm2  ;;  %987 = vmatpush3.bf16.msra.mxu1 %v1070_v32  ;;  %v432_v40 = vsel %vm431_vm5, %v423_v35, %v429_v36 }
  0x2a   : > { %988 = vmatprep.subr.bf16.mxu1 %v1089_v3  ;;  %v456_v38 = vsel %vm454_vm4, %v455_v33, %v451_v31  ;;  %v932_v42 = vpack.c.bf16 %v432_v40, %v432_v40  ;;  %v439_v60 = vsel %vm438_vm8, %v433_v57, %v436_v58 }
  0x2b   : > { %1009 = vmatpush3.bf16.msra.mxu0 %v1060_v22  ;;  %vm951_vm6 = vcmp.ne.s32.totalorder %v456_v38, 0  ;;  %vm952_vm9 = vcmp.ne.s32.totalorder %v456_v38, 15  ;;  %v945_v61 = vpack.c.bf16 %v439_v60, %v439_v60 }
  0x2c   : > { %1010 = vmatprep.subr.bf16.mxu0 %v1089_v3  ;;  %vm931_vm7 = vmpackc.low %vm951_vm6, %vm951_vm6 }
  0x2d   : > { %989 = vmatpush3.bf16.msra.mxu1 %v1072_v37  ;;  %vm944_vm10 = vmpackc.low %vm952_vm9, %vm952_vm9 }
  0x2e   : > { %990 = vmatprep.subr.bf16.mxu1 %v1089_v3 }
  0x2f   : > { %1011 = vmatpush3.bf16.msra.mxu0 %v1061_v27 }
  0x30   : > { %1012 = vmatprep.subr.bf16.mxu0 %v1089_v3 }
  0x31   : > { %991 = vmatpush3.bf16.msra.mxu1 %v1074_v41 }
  0x32   : > { %992 = vmatprep.subr.bf16.mxu1 %v1089_v3 }
  0x33   : > { %1013 = vmatpush3.bf16.msra.mxu0 %v1062_v34 }
  0x34   : > { %1014 = vmatprep.subr.bf16.mxu0 %v1089_v3 }
  0x35   : > { %993 = vmatpush3.bf16.msra.mxu1 %v1076_v44 }
  0x36   : > { %994 = vmatprep.subr.bf16.mxu1 %v1089_v3 }
  0x37   : > { %1015 = vmatpush3.bf16.msra.mxu0 %v1063_v39 }
  0x38   : > { %1020 = vmatprep.subr.bf16.mxu0 %v1089_v3 }
  0x39   : > { %995 = vmatpush3.bf16.msra.mxu1 %v1078_v46 }
  0x3a   : > { %1017 = vmatmul.mubr.msk.bf16.vlgmr.msra.gmra.mrb[0].mxu0 %vm931_vm7, %v932_v42 }
  0x3b   : > { %1021 = vmatpush3.bf16.msra.mxu0 %v1065_v43  ;;  %1036 = vmatprep.mubr.msk.bf16.mxu0 %vm1090_vm0, %v1089_v3 }
  0x3c   : > { %1022 = vmatprep.subr.bf16.mxu0 %v1089_v3  ;;  %997 = vmatmul.mubr.bf16.vlgmr.msra.gmra.mrb[0].mxu1 %v482_v47 }
  0x3f   : > { %1023 = vmatpush3.bf16.msra.mxu0 %v1067_v45 }
  0x40   : > { %1024 = vmatprep.subr.bf16.mxu0 %v1089_v3 }
  0x43   : > { %1025 = vmatpush3.bf16.msra.mxu0 %v1069_v48 }
  0x44   : > { %1026 = vmatprep.subr.bf16.mxu0 %v1089_v3 }
  0x47   : > { %1027 = vmatpush3.bf16.msra.mxu0 %v1071_v51 }
  0x48   : > { %1028 = vmatprep.subr.bf16.mxu0 %v1089_v3 }
  0x4b   : > { %1029 = vmatpush3.bf16.msra.mxu0 %v1073_v53 }
  0x4c   : > { %1030 = vmatprep.subr.bf16.mxu0 %v1089_v3 }
  0x4f   : > { %1031 = vmatpush3.bf16.msra.mxu0 %v1075_v54 }
  0x50   : > { %1032 = vmatprep.subr.bf16.mxu0 %v1089_v3 }
  0x53   : > { %1033 = vmatpush3.bf16.msra.mxu0 %v1077_v56 }
  0x54   : > { %1034 = vmatprep.subr.bf16.mxu0 %v1089_v3 }
  0x57   : > { %1035 = vmatpush3.bf16.msra.mxu0 %v1079_v59 }
  0x5a   : > { %1037 = vmatmul.mubr.msk.bf16.vlgmr.msra.gmra.mrb[0].mxu0 %vm944_vm10, %v945_v61 }
 0x10f   : > { %v581_v62 = vpop.f32.mrb[0].mxu1 }
 0x110   : > { %v998_v63 = vpop.f32.mrb[1].mxu1 }
 0x111   : > { %v584_v0 = vpop.f32.mrb[2].mxu1 }
 0x112   : > { %v999_v1 = vpop.f32.mrb[3].mxu1 }
 0x12d   : > { %v774_v2 = vpop.f32.mrb[0].mxu0 }
 0x12e   : > { %v1040_v4 = vadd.f32 %v774_v2, %v581_v62  ;;  %v1038_v5 = vpop.f32.mrb[1].mxu0 }
 0x12f   : > { %v777_v6 = vpop.f32.mrb[2].mxu0 }
 0x130   : > { %781 = vst [vmem:[%s1163_s21] sm:$0xff] %v1040_v4  ;;  %v783_v7 = vrot.slane %v1040_v4, 4  ;;  %v792_v8 = vmul.f32 %v1040_v4, %v1040_v4  ;;  %v1039_v9 = vpop.f32.mrb[3].mxu0 }
 0x132   : > { %v784_v10 = vadd.f32 %v1040_v4, %v783_v7  ;;  %v793_v11 = vrot.slane %v792_v8, 4 }
 0x134   : > { %v785_v12 = vrot.slane %v784_v10, 2  ;;  %v794_v3 = vadd.f32 %v793_v11, %v792_v8 }
 0x136   : > { %v786_v13 = vadd.f32 %v785_v12, %v784_v10  ;;  %v795_v14 = vrot.slane %v794_v3, 2 }
 0x138   : > { %v787_v15 = vrot.slane %v786_v13, 1  ;;  %v796_v16 = vadd.f32 %v795_v14, %v794_v3 }
 0x13a   : > { %v788_v18 = vadd.f32 %v787_v15, %v786_v13  ;;  %v797_v19 = vrot.slane %v796_v16, 1 }
 0x13c   : > { %v789_v21 = vadd.f32 %v788_v18, %v782_v17  ;;  %v798_v22 = vadd.f32 %v797_v19, %v796_v16 }
 0x13e   : > { %790 = vst [vmem:[%s1339_s8] sm:$0x1] %v789_v21  ;;  %v799_v23 = vadd.f32 %v798_v22, %v791_v20 }
 0x140   : > { %800 = vst [vmem:[%s1340_s9] sm:$0x1] %v799_v23 }
 0x141 PF: > { %s20_s30 = sadd.s32 1, %s1086_s30  }
 0x142   : > { %p17_p8 = scmp.ge.s32.totalorder %s20_s30, 6  }
 0x144   :  { %19 = sbr.rel (!%p17_p8) target bundleno = 1 (0x1), region = 104 }

</bundles_post_ra>
